<compile_context>
chip_gen: v6e
topology: v6e:2x2x1
jax: 0.10.0
libtpu: 0.0.40
codegen_flags: <defaults>
</compile_context>

<pallas_src>
import jax
import jax.numpy as jnp
from jax import lax
from jax.experimental import pallas as pl
from jax.experimental.pallas import tpu as pltpu

_INV_SQRT2 = 0.7071067811865476


def _round_up(n, m):
    return -(-n // m) * m


def _pick_tile_hw(hw_padded):
    # hw_padded is always a multiple of 128, so this always terminates at 128.
    for t in (512, 256, 128):
        if hw_padded % t == 0:
            return t
    return hw_padded


# --------------------------- exact-erf GELU (f32) -----------------------------

def _erf_f32(z):
    # Abramowitz & Stegun 7.1.26 rational approximation of erf (|err|<1.5e-7).
    # nn.GELU() default is the exact erf GELU.  The reciprocal runs on the EUP
    # (vrcp) plus one Newton step, so it is ~f32-accurate while using almost no
    # VALU slots.
    a1, a2, a3, a4, a5 = (0.254829592, -0.284496736, 1.421413741,
                          -1.453152027, 1.061405429)
    p = 0.3275911
    za = jnp.abs(z)
    d = 1.0 + p * za
    t = pl.reciprocal(d, approx=True)
    t = t * (2.0 - d * t)                       # one Newton refinement -> ~f32
    poly = ((((a5 * t + a4) * t + a3) * t + a2) * t + a1) * t
    e = 1.0 - poly * jnp.exp(-za * za)
    return jnp.where(z >= 0.0, e, -e)


def _gelu_exact(h):
    # TODO(synk): on v6e/v7x a bf16 polynomial (or tanh GELU) would halve the
    # VALU work at large hidden widths; kept f32 here for exact-erf parity and
    # because v5e has no bf16 VPU.
    return 0.5 * h * (1.0 + _erf_f32(h * _INV_SQRT2))


# ------------------------------ Pallas kernel ---------------------------------

def _mlp_kernel(x_ref, w1_ref, b1_ref, w2_ref, b2_ref, o_ref):
    """Fused fc1 -> GELU -> fc2 for one (batch, H*W-tile) block, NCHW-native.

    x_ref : (1, C,  T) bf16     w1_ref: (C,  Ch) bf16    b1_ref: (Ch, 1) f32
    o_ref : (1, Co, T) f32      w2_ref: (Ch, Co) bf16    b2_ref: (Co, 1) f32
    """
    x = x_ref[0]                                            # (C, T) bf16
    # fc1: contract over C (dim 0 of both operands) -> (Ch, T); f32 accumulate.
    h = lax.dot_general(w1_ref[...], x, (((0,), (0,)), ((), ())),
                        preferred_element_type=jnp.float32)
    h = _gelu_exact(h + b1_ref[...])                        # f32 elementwise
    # fc2: contract over Ch -> (Co, T); activations cast to bf16 at the matmul.
    y = lax.dot_general(w2_ref[...], h.astype(jnp.bfloat16),
                        (((0,), (0,)), ((), ())),
                        preferred_element_type=jnp.float32)
    # Dropout(p=0.0) is a no-op.
    o_ref[0] = y + b2_ref[...]                              # lane-dense store


# -------------------- optional single-buffering of weights --------------------

_BUFFERED1_KW = None          # resolved once by _resolve_weight_buffering()


def _resolve_weight_buffering():
    """Probe whether pipeline_mode=pl.Buffered(1) (single-buffered, constant
    index operands) is supported by the installed Pallas; fall back to default
    double-buffering otherwise.  Must be called outside jit (it is, in main)."""
    global _BUFFERED1_KW
    if _BUFFERED1_KW is not None:
        return _BUFFERED1_KW
    try:
        def _probe(a_ref, o_ref):
            o_ref[...] = a_ref[...]

        out = pl.pallas_call(
            _probe,
            out_shape=jax.ShapeDtypeStruct((16, 128), jnp.float32),
            grid=(2,),
            in_specs=[pl.BlockSpec((8, 128), lambda i: (0, 0),
                                   pipeline_mode=pl.Buffered(1))],
            out_specs=pl.BlockSpec((8, 128), lambda i: (i, 0)),
        )(jnp.ones((8, 128), jnp.float32))
        jax.block_until_ready(out)
        _BUFFERED1_KW = {"pipeline_mode": pl.Buffered(1)}
    except Exception:
        _BUFFERED1_KW = {}                   # unsupported -> default buffering
    return _BUFFERED1_KW


# --------------------------------- wrapper ------------------------------------

@jax.jit
def mlp_forward(x_nchw, w1, b1, w2, b2):
    """PyTorch Mlp.forward semantics: NCHW in -> NCHW out (out_features = Co).

    Pass w1/w2 already in bf16 (pre-cast once, outside this jitted call)."""
    B, C, H, W = x_nchw.shape
    Ch = w1.shape[1]
    Co = w2.shape[1]

    HW = H * W
    HWp = _round_up(HW, 128)
    x = x_nchw.reshape(B, C, HW).astype(jnp.bfloat16)   # bf16 into the kernel
    if HWp != HW:
        # TODO(synk): mask the ragged tail tile in-kernel instead of pad+slice.
        x = jnp.pad(x, ((0, 0), (0, 0), (0, HWp - HW)))

    thw = _pick_tile_hw(HWp)
    if B * (HWp // thw) < 2 and thw > 128:
        thw //= 2               # keep >=2 parallel grid steps for v7x megacore

    wk = dict(_BUFFERED1_KW) if _BUFFERED1_KW else {}
    const = lambda b, t: (0, 0)

    y = pl.pallas_call(
        _mlp_kernel,
        out_shape=jax.ShapeDtypeStruct((B, Co, HWp), jnp.float32),
        grid=(B, HWp // thw),
        in_specs=[
            pl.BlockSpec((1, C, thw), lambda b, t: (b, 0, t)),   # x tile (bf16)
            pl.BlockSpec((C, Ch), const, **wk),                  # w1 (bf16)
            pl.BlockSpec((Ch, 1), const, **wk),                  # b1 (f32)
            pl.BlockSpec((Ch, Co), const, **wk),                 # w2 (bf16)
            pl.BlockSpec((Co, 1), const, **wk),                  # b2 (f32)
        ],
        out_specs=pl.BlockSpec((1, Co, thw), lambda b, t: (b, 0, t)),
        compiler_params=pltpu.CompilerParams(
            dimension_semantics=("parallel", "parallel"),
            vmem_limit_bytes=48 * 1024 * 1024),
    )(x,
      w1.astype(jnp.bfloat16), b1.reshape(Ch, 1).astype(jnp.float32),
      w2.astype(jnp.bfloat16), b2.reshape(Co, 1).astype(jnp.float32))

    if HWp != HW:
        y = y[..., :HW]
    return y.reshape(B, Co, H, W)


# ----------------------------------- main --------------------------------------

if __name__ == "__main__":
    key = jax.random.PRNGKey(0)
    kx, k1, k2, k3, k4 = jax.random.split(key, 5)

    # Small shapes consistent with the module: B=2, C=32, 16x16 spatial,
    # hidden_features=64 (mlp_ratio=2, as TransformerIR's blocks use).
    B, C, H, W = 2, 32, 16, 16
    hidden = 64

    x = jax.random.normal(kx, (B, C, H, W), jnp.float32)
    w1 = jax.random.normal(k1, (C, hidden), jnp.float32) / (C ** 0.5)
    b1 = 0.01 * jax.random.normal(k2, (hidden,), jnp.float32)
    w2 = jax.random.normal(k3, (hidden, C), jnp.float32) / (hidden ** 0.5)
    b2 = 0.01 * jax.random.normal(k4, (C,), jnp.float32)

    # Pre-cast weights to bf16 ONCE outside the jitted forward (perf review):
    # avoids a separate f32-read/bf16-write pass over the weights per call.
    w1_bf = jnp.asarray(w1, jnp.bfloat16)
    w2_bf = jnp.asarray(w2, jnp.bfloat16)

    _resolve_weight_buffering()          # one-time probe, outside jit

    out = jax.block_until_ready(mlp_forward(x, w1_bf, b1, w2_bf, b2))

    # Pure-JAX f32 reference (exact erf GELU).  Tolerances reflect the
    # intentional bf16 matmul-operand precision tradeoff.
    xt = jnp.transpose(x, (0, 2, 3, 1)).reshape(B, H * W, C)
    h = xt @ w1 + b1
    h = 0.5 * h * (1.0 + lax.erf(h * _INV_SQRT2))
    yr = h @ w2 + b2
    r = jnp.transpose(yr.reshape(B, H, W, C), (0, 3, 1, 2))

    assert out.shape == (B, C, H, W)
    assert bool(jnp.isfinite(out).all())
    max_err = float(jnp.max(jnp.abs(out - r)))
    assert bool(jnp.allclose(out, r, atol=1e-1, rtol=5e-2)), max_err
    print("KERNEL_OK")
</pallas_src>

<mosaic_0001>
module attributes {stable_mosaic.version = 11 : i64} {
  func.func @_probe(%arg0: i32, %arg1: memref<8x128xf32, #tpu.memory_space<vmem>>, %arg2: memref<8x128xf32, #tpu.memory_space<vmem>>) attributes {dimension_semantics = [#tpu.dimension_semantics<arbitrary>], iteration_bounds = array<i64: 2>, scalar_prefetch = 0 : i64, scratch_operands = 0 : i64, tpu.core_type = #tpu.core_type<tc>, window_params = [{pipeline_mode = #tpu.pipeline_mode<synchronous>, transform_indices = @transform_0, window_bounds = array<i64: 8, 128>}, {transform_indices = @transform_1, window_bounds = array<i64: 8, 128>}]} {
    %c0 = arith.constant 0 : index
    %c0_0 = arith.constant 0 : index
    %0 = vector.load %arg1[%c0, %c0_0] : memref<8x128xf32, #tpu.memory_space<vmem>>, vector<8x128xf32>
    %c0_1 = arith.constant 0 : index
    %c0_2 = arith.constant 0 : index
    %1 = vector.load %arg2[%c0_1, %c0_2] : memref<8x128xf32, #tpu.memory_space<vmem>>, vector<8x128xf32>
    tpu.vector_store %arg2[%c0_1, %c0_2], %0 {strides = array<i32>} : memref<8x128xf32, #tpu.memory_space<vmem>>, vector<8x128xf32>,
    return
  }
  func.func @transform_0(%arg0: i32) -> (i32, i32) {
    %c0_i32 = arith.constant 0 : i32
    %c0_i32_0 = arith.constant 0 : i32
    %c0_i32_1 = arith.constant 0 : i32
    return %c0_i32, %c0_i32_0 : i32, i32
  }
  func.func @transform_1(%arg0: i32) -> (i32, i32) {
    %c0_i32 = arith.constant 0 : i32
    %c0_i32_0 = arith.constant 0 : i32
    return %arg0, %c0_i32 : i32, i32
  }
}

module attributes {stable_mosaic.version = 11 : i64} {
  func.func @_mlp_kernel(%arg0: i32, %arg1: i32, %arg2: memref<1x32x256xbf16, #tpu.memory_space<vmem>>, %arg3: memref<32x64xbf16, #tpu.memory_space<vmem>>, %arg4: memref<64x1xf32, #tpu.memory_space<vmem>>, %arg5: memref<64x32xbf16, #tpu.memory_space<vmem>>, %arg6: memref<32x1xf32, #tpu.memory_space<vmem>>, %arg7: memref<1x32x256xf32, #tpu.memory_space<vmem>>) attributes {dimension_semantics = [#tpu.dimension_semantics<parallel>, #tpu.dimension_semantics<parallel>], iteration_bounds = array<i64: 2, 1>, scalar_prefetch = 0 : i64, scratch_operands = 0 : i64, tpu.core_type = #tpu.core_type<tc>, window_params = [{transform_indices = @transform_0, window_bounds = array<i64: 1, 32, 256>}, {pipeline_mode = #tpu.pipeline_mode<synchronous>, transform_indices = @transform_1, window_bounds = array<i64: 32, 64>}, {pipeline_mode = #tpu.pipeline_mode<synchronous>, transform_indices = @transform_2, window_bounds = array<i64: 64, 1>}, {pipeline_mode = #tpu.pipeline_mode<synchronous>, transform_indices = @transform_3, window_bounds = array<i64: 64, 32>}, {pipeline_mode = #tpu.pipeline_mode<synchronous>, transform_indices = @transform_4, window_bounds = array<i64: 32, 1>}, {transform_indices = @transform_5, window_bounds = array<i64: 1, 32, 256>}]} {
    %c0 = arith.constant 0 : index
    %c0_0 = arith.constant 0 : index
    %c0_1 = arith.constant 0 : index
    %0 = vector.load %arg2[%c0, %c0_0, %c0_1] : memref<1x32x256xbf16, #tpu.memory_space<vmem>>, vector<1x32x256xbf16>
    %1 = vector.shape_cast %0 : vector<1x32x256xbf16> to vector<32x256xbf16>
    %c0_2 = arith.constant 0 : index
    %c0_3 = arith.constant 0 : index
    %2 = vector.load %arg3[%c0_2, %c0_3] : memref<32x64xbf16, #tpu.memory_space<vmem>>, vector<32x64xbf16>
    %cst = arith.constant dense<0.000000e+00> : vector<64x256xf32>
    %3 = tpu.matmul %2, %1, %cst {dimension_numbers = #tpu.dot_dimension_numbers<[0], [0], [1], [1], [0, 1, 1, 1], [], []>} : vector<32x64xbf16>, vector<32x256xbf16>, vector<64x256xf32> -> vector<64x256xf32>
    %c0_4 = arith.constant 0 : index
    %c0_5 = arith.constant 0 : index
    %4 = vector.load %arg4[%c0_4, %c0_5] : memref<64x1xf32, #tpu.memory_space<vmem>>, vector<64x1xf32>
    %5 = vector.broadcast %4 : vector<64x1xf32> to vector<64x256xf32>
    %6 = arith.addf %3, %5 : vector<64x256xf32>
    %cst_6 = arith.constant 5.000000e-01 : f32
    %7 = vector.broadcast %cst_6 : f32 to vector<64x256xf32>
    %8 = arith.mulf %7, %6 : vector<64x256xf32>
    %cst_7 = arith.constant 0.707106769 : f32
    %9 = vector.broadcast %cst_7 : f32 to vector<64x256xf32>
    %10 = arith.mulf %6, %9 : vector<64x256xf32>
    %11 = math.absf %10 : vector<64x256xf32>
    %cst_8 = arith.constant 0.327591091 : f32
    %12 = vector.broadcast %cst_8 : f32 to vector<64x256xf32>
    %13 = arith.mulf %12, %11 : vector<64x256xf32>
    %cst_9 = arith.constant 1.000000e+00 : f32
    %14 = vector.broadcast %cst_9 : f32 to vector<64x256xf32>
    %15 = arith.addf %14, %13 : vector<64x256xf32>
    %16 = tpu.reciprocal %15 {approx = true} : vector<64x256xf32> -> vector<64x256xf32>
    %17 = arith.mulf %15, %16 : vector<64x256xf32>
    %cst_10 = arith.constant 2.000000e+00 : f32
    %18 = vector.broadcast %cst_10 : f32 to vector<64x256xf32>
    %19 = arith.subf %18, %17 : vector<64x256xf32>
    %20 = arith.mulf %16, %19 : vector<64x256xf32>
    %cst_11 = arith.constant 1.06140542 : f32
    %21 = vector.broadcast %cst_11 : f32 to vector<64x256xf32>
    %22 = arith.mulf %21, %20 : vector<64x256xf32>
    %cst_12 = arith.constant -1.45315206 : f32
    %23 = vector.broadcast %cst_12 : f32 to vector<64x256xf32>
    %24 = arith.addf %22, %23 : vector<64x256xf32>
    %25 = arith.mulf %24, %20 : vector<64x256xf32>
    %cst_13 = arith.constant 1.42141378 : f32
    %26 = vector.broadcast %cst_13 : f32 to vector<64x256xf32>
    %27 = arith.addf %25, %26 : vector<64x256xf32>
    %28 = arith.mulf %27, %20 : vector<64x256xf32>
    %cst_14 = arith.constant -0.284496725 : f32
    %29 = vector.broadcast %cst_14 : f32 to vector<64x256xf32>
    %30 = arith.addf %28, %29 : vector<64x256xf32>
    %31 = arith.mulf %30, %20 : vector<64x256xf32>
    %cst_15 = arith.constant 0.254829586 : f32
    %32 = vector.broadcast %cst_15 : f32 to vector<64x256xf32>
    %33 = arith.addf %31, %32 : vector<64x256xf32>
    %34 = arith.mulf %33, %20 : vector<64x256xf32>
    %cst_16 = arith.constant 0.000000e+00 : f32
    %35 = vector.broadcast %cst_16 : f32 to vector<64x256xf32>
    %36 = arith.subf %35, %11 : vector<64x256xf32>
    %37 = arith.mulf %36, %11 : vector<64x256xf32>
    %38 = math.exp %37 : vector<64x256xf32>
    %39 = arith.mulf %34, %38 : vector<64x256xf32>
    %cst_17 = arith.constant 1.000000e+00 : f32
    %40 = vector.broadcast %cst_17 : f32 to vector<64x256xf32>
    %41 = arith.subf %40, %39 : vector<64x256xf32>
    %cst_18 = arith.constant 0.000000e+00 : f32
    %42 = vector.broadcast %cst_18 : f32 to vector<64x256xf32>
    %43 = arith.cmpf oge, %10, %42 : vector<64x256xf32>
    %cst_19 = arith.constant 0.000000e+00 : f32
    %44 = vector.broadcast %cst_19 : f32 to vector<64x256xf32>
    %45 = arith.subf %44, %41 : vector<64x256xf32>
    %46 = arith.select %43, %41, %45 : vector<64x256xi1>, vector<64x256xf32>
    %cst_20 = arith.constant 1.000000e+00 : f32
    %47 = vector.broadcast %cst_20 : f32 to vector<64x256xf32>
    %48 = arith.addf %47, %46 : vector<64x256xf32>
    %49 = arith.mulf %8, %48 : vector<64x256xf32>
    %c0_21 = arith.constant 0 : index
    %c0_22 = arith.constant 0 : index
    %50 = vector.load %arg5[%c0_21, %c0_22] : memref<64x32xbf16, #tpu.memory_space<vmem>>, vector<64x32xbf16>
    %51 = arith.truncf %49 : vector<64x256xf32> to vector<64x256xbf16>
    %cst_23 = arith.constant dense<0.000000e+00> : vector<32x256xf32>
    %52 = tpu.matmul %50, %51, %cst_23 {dimension_numbers = #tpu.dot_dimension_numbers<[0], [0], [1], [1], [0, 1, 1, 1], [], []>} : vector<64x32xbf16>, vector<64x256xbf16>, vector<32x256xf32> -> vector<32x256xf32>
    %c0_24 = arith.constant 0 : index
    %c0_25 = arith.constant 0 : index
    %53 = vector.load %arg6[%c0_24, %c0_25] : memref<32x1xf32, #tpu.memory_space<vmem>>, vector<32x1xf32>
    %54 = vector.broadcast %53 : vector<32x1xf32> to vector<32x256xf32>
    %55 = arith.addf %52, %54 : vector<32x256xf32>
    %c0_26 = arith.constant 0 : index
    %c0_27 = arith.constant 0 : index
    %c0_28 = arith.constant 0 : index
    %56 = vector.load %arg7[%c0_26, %c0_27, %c0_28] : memref<1x32x256xf32, #tpu.memory_space<vmem>>, vector<1x32x256xf32>
    %57 = vector.shape_cast %56 : vector<1x32x256xf32> to vector<32x256xf32>
    %58 = vector.shape_cast %55 : vector<32x256xf32> to vector<1x32x256xf32>
    tpu.vector_store %arg7[%c0_26, %c0_27, %c0_28], %58 {strides = array<i32>} : memref<1x32x256xf32, #tpu.memory_space<vmem>>, vector<1x32x256xf32>,
    return
  }
  func.func @transform_0(%arg0: i32, %arg1: i32) -> (i32, i32, i32) {
    %c0_i32 = arith.constant 0 : i32
    %c0_i32_0 = arith.constant 0 : i32
    return %arg0, %c0_i32, %arg1 : i32, i32, i32
  }
  func.func @transform_1(%arg0: i32, %arg1: i32) -> (i32, i32) {
    %c0_i32 = arith.constant 0 : i32
    %c0_i32_0 = arith.constant 0 : i32
    %c0_i32_1 = arith.constant 0 : i32
    return %c0_i32, %c0_i32_0 : i32, i32
  }
  func.func @transform_2(%arg0: i32, %arg1: i32) -> (i32, i32) {
    %c0_i32 = arith.constant 0 : i32
    %c0_i32_0 = arith.constant 0 : i32
    %c0_i32_1 = arith.constant 0 : i32
    return %c0_i32, %c0_i32_0 : i32, i32
  }
  func.func @transform_3(%arg0: i32, %arg1: i32) -> (i32, i32) {
    %c0_i32 = arith.constant 0 : i32
    %c0_i32_0 = arith.constant 0 : i32
    %c0_i32_1 = arith.constant 0 : i32
    return %c0_i32, %c0_i32_0 : i32, i32
  }
  func.func @transform_4(%arg0: i32, %arg1: i32) -> (i32, i32) {
    %c0_i32 = arith.constant 0 : i32
    %c0_i32_0 = arith.constant 0 : i32
    %c0_i32_1 = arith.constant 0 : i32
    return %c0_i32, %c0_i32_0 : i32, i32
  }
  func.func @transform_5(%arg0: i32, %arg1: i32) -> (i32, i32, i32) {
    %c0_i32 = arith.constant 0 : i32
    %c0_i32_0 = arith.constant 0 : i32
    return %arg0, %c0_i32, %arg1 : i32, i32, i32
  }
}

</mosaic_0001>

<bundles_post_ra>
// kernel: tpu_custom_call.1
= control target key start
LH: loop header
LB: loop body
LE: loop exit
PB: predicated region body
PF: predicated region fallthrough
CT: control target
= control target key end

     0   :  { %6 = vsyncpa [#allocation3], 0  ;;  %s453_s0 = inlined_call_operand.hbm [shape: f32[8,128], index: 0, kind: input, shape index: {}]   ;;  %s454_s1 = inlined_call_operand.hbm [shape: f32[16,128], index: 1, kind: output, shape index: {}]  }
   0x1   :  { %7 = vsyncpa [#allocation4], 0 }
   0x2   :  { %9 = vsyncpa [#allocation4 + $0x1], 0  ;;  %s347_s6 = smov 0   ;;  %s349_s7 = smov 0  }
   0x3   :  { %s351_s8 = smov 0   ;;  %s353_s9 = smov 0  }
   0x4 LB: > { %s368_s10 = sadd.s32 4294967295, %s333_s9   ;;  %s183_s11 = sadd.s32 4294967294, %s333_s9   ;;  %s333_s9 = sphi %s353_s9, %s462_s9   ;;  %s329_s8 = sphi %s351_s8, %s461_s8   ;;  %s325_s7 = sphi %s349_s7, %s460_s7   ;;  %s321_s6 = sphi %s347_s6, %s459_s6  }
   0x5   : > { %s372_s12 = sadd.s32 1, %s333_s9   ;;  %s43_s13 = sadd.s32 1, %s329_s8 }
   0x6   : > { %s40_s14 = ssub.s32 %s333_s9, %s372_s12  ;;  %p53_p0 = scmp.ne.s32.totalorder %s329_s8, %s325_s7 }
   0x7   : > { %p41_p1 = scmp.eq.s32.totalorder %s40_s14, 0  ;;  %p54_p2 = scmp.eq.s32.totalorder %s368_s10, 1 }
   0x8   : > { %p59_p3 = scmp.ne.s32.totalorder %s325_s7, %s321_s6  ;;  %p60_p4 = scmp.eq.s32.totalorder %s183_s11, 1 }
   0x9   : > { %s383_s15 = scalar_select %p41_p1, %s329_s8, %s43_s13  }
   0xa   : > { %p385_p5 = por %p54_p2, %p53_p0  ;;  %p389_p6 = por %p60_p4, %p59_p3 }
   0xb   : > { %p184_p7 = scmp.ge.s32.totalorder %s333_s9, 1  ;;  %p67_p8 = scmp.lt.s32.totalorder %s333_s9, 3 }
   0xc   : > { %s456_s17 = scalar_select %p389_p6, 1, 0 }
   0xd   : > { %p207_p9 = scmp.eq.s32.totalorder %s368_s10, 0  ;;  %p396_p10 = pnand %p184_p7, %p67_p8 }
   0xe   : > { %s335_s19 = smov [#allocation2]  }
   0xf   : > { %s80_s20 = sshll.u32 %s335_s19, 4  ;;  %p199_p11 = pneg %p396_p10  ;;  %s81_s20 = int_to_ptr.vmem [resolvable:$true] %s80_s20 }
  0x10   : > { %s254_s21 = scalar_lea.vmem %s81_s20, 128  ;;  %p262_p3 = scmp.lt.s32.totalorder %s81_s20, %s81_s20 }
  0x11   : > { %p200_p12 = pnand %p207_p9, %p199_p11  ;;  %p255_p0 = scmp.ne.s32.totalorder %s81_s20, %s254_s21 }
  0x12   : > { %p263_p4 = scmp.lt.s32.totalorder %s254_s21, %s254_s21 }
  0x13   : > { %p245_p13 = pneg %p200_p12 }
  0x14   : > { %p264_p6 = por %p263_p4, %p262_p3 }
  0x15   : > { %p257_p1 = pnand %p255_p0, %p245_p13 }
  0x17   : > { %p258_p2 = pneg %p257_p1 }
  0x19   : > { %p265_p7 = pnand %p264_p6, %p258_p2 }
  0x1b   : > { %268 = shalt.err (!%p265_p7)
}
  0x1c   : > { %202 = dma.hbm_to_vmem [thread:$0]  (!%p200_p12), %s453_s0, 128, %s81_s20, [#allocation3]  }
  0x1d   : > { %93 = sbr.rel (%p396_p10) target bundleno = 60 (0x3c), region = 24 }
  0x22   : > { %312 = dma.done.wait (%p207_p9), [#allocation3], 128  }
  0x23   : > { %314 = vsyncadd (%p207_p9), [#allocation3], 4294967168  ;;  %s105_s24 = sand.u32 1, %s325_s7   ;;  %s190_s28 = sshll.u32 %s368_s10, 7  ;;  %v108_v0 = vld [vmem:[#allocation2] sm:$0xff] }
  0x24   : > { %s188_s25 = sshll.u32 %s105_s24, 3  ;;  %s122_s2 = scalar_lea.hbm %s454_s1, %s190_s28 }
  0x25   : > { %s107_s26 = scalar_lea.vmem [#allocation5], %s188_s25  ;;  %s111_s3 = scalar_lea.sflag [#allocation4], %s105_s24 }
  0x26   : > { %s124_s27 = sshll.u32 %s107_s26, 4  ;;  %109 = vst [vmem:[%s107_s26] sm:$0xff] %v108_v0  ;;  %s336_s5 = smov [#allocation5]   ;;  %s415_s27 = int_to_ptr.vmem [resolvable:$true] %s124_s27 }
  0x27   : > { %s269_s4 = scalar_lea.vmem %s415_s27, 128  ;;  %s273_s11 = sshll.u32 %s336_s5, 4  ;;  %s274_s11 = int_to_ptr.vmem [resolvable:$false] %s273_s11 }
  0x28   : > { %p270_p6 = scmp.ne.s32.totalorder %s415_s27, %s269_s4  ;;  %s275_s10 = scalar_lea.vmem %s274_s11, 256 }
  0x29   : > { %p276_p10 = scmp.lt.s32.totalorder %s415_s27, %s274_s11  ;;  %p277_p11 = scmp.lt.s32.totalorder %s275_s10, %s269_s4 }
  0x2a   : > { %p271_p8 = pnand %p270_p6, %p385_p5 }
  0x2b   : > { %p278_p12 = por %p277_p11, %p276_p10 }
  0x2c   : > { %p272_p9 = pneg %p271_p8 }
  0x2e   : > { %p279_p13 = pnand %p278_p12, %p272_p9 }
  0x30   : > { %282 = shalt.err (!%p279_p13)
}
  0x31   : > { %s283_s13 = scalar_lea.hbm %s122_s2, 128  ;;  %s287_s19 = scalar_lea.hbm %s454_s1, 256 }
  0x32   : > { %p284_p0 = scmp.ne.s32.totalorder %s122_s2, %s283_s13  ;;  %p288_p3 = scmp.lt.s32.totalorder %s122_s2, %s454_s1 }
  0x33   : > { %p289_p4 = scmp.lt.s32.totalorder %s287_s19, %s283_s13 }
  0x34   : > { %p285_p1 = pnand %p284_p0, %p385_p5 }
  0x35   : > { %p290_p7 = por %p289_p4, %p288_p3 }
  0x36   : > { %p286_p2 = pneg %p285_p1 }
  0x38   : > { %p291_p6 = pnand %p290_p7, %p286_p2 }
  0x3a   : > { %294 = shalt.err (!%p291_p6)
}
  0x3b   : > { %197 = dma.vmem_to_hbm [thread:$0]  (%p385_p5), %s415_s27, 128, %s122_s2, %s111_s3  }
  0x3c PF: > { %p209_p8 = scmp.ge.s32.totalorder %s333_s9, 2  ;;  %s136_s22 = sand.u32 1, %s321_s6  }
  0x3d   : > { %p458_p9 = scmp.ne.s32.totalorder %s456_s17, 0  ;;  %s137_s23 = scalar_lea.sflag [#allocation4], %s136_s22 }
  0x3f   : > { %p204_p10 = pnand %p209_p8, %p458_p9 }
  0x41   : > { %p205_p11 = pneg %p204_p10 }
  0x43   : > { %316 = dma.done.wait (%p205_p11), %s137_s23, 128  }
  0x44   : > { %318 = vsyncadd (%p205_p11), %s137_s23, 4294967168  ;;  %p12_p12 = scmp.ge.s32.totalorder %s372_s12, 4   ;;  %s459_s6 = smov %s325_s7 }
  0x45   : > { %s460_s7 = smov %s329_s8  ;;  %s461_s8 = smov %s383_s15 }
  0x46   : > { %s462_s9 = smov %s372_s12  ;;  %14 = sbr.rel (!%p12_p12) target bundleno = 4 (0x4), region = 61 }
  0x4b   :  { %142 = vsyncpa [#allocation3], 1 }
  0x4c   :  { %144 = vsyncpa [#allocation3 + $0x1], 1 }
  0x4d   :  { %145 = vsyncpa [#allocation4], 1 }
  0x4e   :  { %147 = vsyncpa [#allocation4 + $0x1], 1 }

// kernel: mlp_forward.1
= control target key start
LH: loop header
LB: loop body
LE: loop exit
PB: predicated region body
PF: predicated region fallthrough
CT: control target
= control target key end

     0   :  { %s1341_s18 = smov 0   ;;  %s1343_s19 = smov 0   ;;  %s1939_s0 = inlined_call_operand.vmem [shape: bf16[2,32,256], index: 0, kind: input, shape index: {}]   ;;  %s1940_s1 = inlined_call_operand.vmem [shape: bf16[32,64], index: 1, kind: input, shape index: {}]   ;;  %s1941_s2 = inlined_call_operand.vmem [shape: f32[64,1], index: 2, kind: input, shape index: {}]   ;;  %s1942_s3 = inlined_call_operand.vmem [shape: bf16[64,32], index: 3, kind: input, shape index: {}]   ;;  %s1943_s4 = inlined_call_operand.vmem [shape: f32[32,1], index: 4, kind: input, shape index: {}]   ;;  %s1944_s5 = inlined_call_operand.vmem [shape: f32[2,32,256], index: 5, kind: output, shape index: {}]  }
   0x1   :  { %s1345_s20 = smov 0  }
   0x2 LB: > { %s27_s21 = sadd.s32 1, %s1304_s19  ;;  %p1158_p0 = scmp.ge.s32.totalorder %s1308_s20, 1  ;;  %s1308_s20 = sphi %s1345_s20, %s15_s20   ;;  %s1304_s19 = sphi %s1343_s19, %s2016_s19   ;;  %s1300_s18 = sphi %s1341_s18, %s2015_s18  }
   0x3   : > { %p29_p1 = scmp.ge.s32.totalorder %s27_s21, 2  ;;  %p208_p2 = scmp.lt.s32.totalorder %s1308_s20, 3 }
   0x5   : > { %s2018_s21 = smov (%p29_p1, %s27_s21), 0  ;;  %p209_p3 = pnand %p1158_p0, %p208_p2 }
   0x7   : > { %212 = sbr.rel (%p209_p3) target bundleno = 657 (0x291), region = 40 }
   0xc   : > { %v1210_v0 = vld [vmem:[%s1940_s1] sm:$0xff]   ;;  %p245_p4 = scmp.lt.s32.totalorder %s1300_s18, 1  ;;  %v1211_v1 = vld [vmem:[%s1940_s1 + $0x8] sm:$0xff]   ;;  %v1945_v2 = vmov 0   ;;  %v279_v3 = vld [vmem:[%s1941_s2 + $0x30] sm:$0xff]  ;;  %vm369_vm0 = vcmask 261120  }
   0xd   : > { %333 = vxpose.xlu0.c.b16.start [1/2] (short) (narrow) %v1210_v0, 64  ;;  %414 = vmatprep.mubr.bf16.mxu0 %v1945_v2  ;;  %v280_v4 = vld [vmem:[%s1941_s2 + $0x38] sm:$0xff]  ;;  %v278_v7 = vld [vmem:[%s1941_s2 + $0x28] sm:$0xff]  ;;  %v275_v10 = vld [vmem:[%s1941_s2 + $0x10] sm:$0xff] }
   0xe   : > { %s2020_s18 = smov (!%p245_p4, %s1300_s18), 1  ;;  %1208 = vset.pattern.permute.xlu1 %v1945_v2  ;;  %1038 = vmatprep.mubr.bf16.mxu1 %v1945_v2  ;;  %v276_v11 = vld [vmem:[%s1941_s2 + $0x18] sm:$0xff]  ;;  %v277_v12 = vld [vmem:[%s1941_s2 + $0x20] sm:$0xff]  ;;  %v274_v14 = vld [vmem:[%s1941_s2 + $0x8] sm:$0xff] }
   0xf   : > { %s1181_s28 = sshll.u32 %s2020_s18, 5  ;;  %313 = vperm.xlu1 %1208, %v279_v3   ;;  %v273_v13 = vld [vmem:[%s1941_s2] sm:$0xff]  ;;  %v936_v16 = vld [vmem:[%s1943_s4 + $0x8] sm:$0xff]  ;;  %v937_v17 = vld [vmem:[%s1943_s4 + $0x10] sm:$0xff]  ;;  %s1182_s16 = sshll.u32 %s2020_s18, 6 }
  0x10   : > { %s252_s6 = scalar_lea.vmem %s1939_s0, %s1181_s28  ;;  %v935_v15 = vld [vmem:[%s1943_s4] sm:$0xff]  ;;  %v938_v18 = vld [vmem:[%s1943_s4 + $0x18] sm:$0xff]  ;;  %v1219_v24 = vld [vmem:[%s1942_s3 + $0x8] sm:$0xff]   ;;  %s262_s23 = scalar_lea.vmem %s1944_s5, %s1182_s16 }
  0x11   : > { %334 = vxpose.xlu0.c.b16.end [2/2] (short) (narrow) %v1211_v1, 64  ;;  %v1212_v5 = vld [vmem:[%s252_s6 + $0x14] ss:$8 sps:$4 sm:$0xff]   ;;  %v1214_v6 = vld [vmem:[%s252_s6 + $0x10] ss:$8 sps:$4 sm:$0xff]   ;;  %v1218_v23 = vld [vmem:[%s1942_s3] sm:$0xff]  }
  0x12   : > { %394 = vmatprep.subr.bf16.mxu0 %v1212_v5  ;;  %v1215_v8 = vld [vmem:[%s252_s6 + $0x4] ss:$8 sps:$4 sm:$0xff]   ;;  %v1217_v9 = vld [vmem:[%s252_s6] ss:$8 sps:$4 sm:$0xff]   ;;  %v1220_v25 = vld [vmem:[%s1942_s3 + $0x10] sm:$0xff]  }
  0x13   : > { %318 = vperm.xlu1 %1208, %v280_v4   ;;  %395 = vmatpush1.bf16.msra.mxu0 %v1214_v6  ;;  %v1221_v26 = vld [vmem:[%s1942_s3 + $0x18] sm:$0xff]  }
  0x14   : > { %396 = vmatprep.subr.bf16.mxu0 %v1215_v8 }
  0x17   : > { %308 = vperm.xlu1 %1208, %v278_v7   ;;  %397 = vmatpush1.bf16.msra.mxu0 %v1217_v9 }
  0x1a   : > { %1209 = vset.pattern.permute.xlu0 %v1945_v2 }
  0x1b   : > { %293 = vperm.xlu1 %1208, %v275_v10  }
  0x1f   : > { %298 = vperm.xlu1 %1208, %v276_v11  }
  0x22   : > { %303 = vperm.xlu0 %1209, %v277_v12  }
  0x23   : > { %283 = vperm.xlu1 %1208, %v273_v13  }
  0x27   : > { %288 = vperm.xlu1 %1208, %v274_v14  }
  0x2b   : > { %941 = vperm.xlu1 %1208, %v935_v15  }
  0x2f   : > { %946 = vperm.xlu1 %1208, %v936_v16  }
  0x33   : > { %951 = vperm.xlu1 %1208, %v937_v17  }
  0x37   : > { %956 = vperm.xlu1 %1208, %v938_v18  }
  0x40   : > { %983 = vxpose.xlu0.c.b16.start [1/4] (short) (narrow) %v1218_v23, 32 }
  0x44   : > { %984 = vxpose.xlu0.c.b16.cont [2/4] (short) (narrow) %v1219_v24, 32 }
  0x48   : > { %985 = vxpose.xlu0.c.b16.cont [3/4] (short) (narrow) %v1220_v25, 32 }
  0x4c   : > { %986 = vxpose.xlu0.c.b16.end [4/4] (short) (narrow) %v1221_v26, 32 }
  0x6f   : > { %v341_v19 = vpop.trf.xlu0 }
  0x70   : > { %1169 = vmatmul.mubr.msk.bf16.vlgmr.msra.gmra.mxu0 %vm369_vm0, %v341_v19 }
  0x71   : > { %424 = vmatprep.mubr.bf16.mxu0 %v1945_v2 }
  0x73   : > { %v342_v20 = vpop.trf.xlu0 }
  0x77   : > { %v343_v21 = vpop.trf.xlu0 }
  0x78   : > { %1170 = vmatmul.mubr.msk.bf16.gmra.mxu0 %vm369_vm0, %v342_v20 }
  0x79   : > { %434 = vmatprep.mubr.bf16.mxu0 %v1945_v2 }
  0x7b   : > { %v344_v22 = vpop.trf.xlu0 }
  0x80   : > { %1171 = vmatmul.mubr.msk.bf16.gmra.mxu0 %vm369_vm0, %v343_v21 }
  0x81   : > { %444 = vmatprep.mubr.bf16.mxu0 %v1945_v2 }
  0x88   : > { %1172 = vmatmul.mubr.msk.bf16.gmra.mxu0 %vm369_vm0, %v344_v22 }
  0x8a   : > { %v1426_v27 = vpop.permute.xlu1 %313 }
  0x8e   : > { %v1428_v28 = vpop.permute.xlu1 %318 }
  0x92   : > { %v1430_v29 = vpop.permute.xlu1 %308 }
  0x96   : > { %v294_v30 = vpop.permute.xlu1 %293 }
  0x9a   : > { %v299_v31 = vpop.permute.xlu1 %298 }
  0x9d   : > { %v304_v13 = vpop.permute.xlu0 %303 }
  0x9e   : > { %v284_v32 = vpop.permute.xlu1 %283 }
  0xa2   : > { %v289_v40 = vpop.permute.xlu1 %288 }
 0x130   : > { %v416_v33 = vpop.f32.mrf.mxu0 }
 0x131   : > { %v1432_v34 = vadd.f32 %v416_v33, %v284_v32 }
 0x132   : > { %v418_v35 = vpop.f32.mrf.mxu0 }
 0x133   : > { %1963 = vst [vmem:[#allocation2_spill] sm:$0xff] %v1432_v34  ;;  %v1435_v36 = vmul.f32 0.70710677, %v1432_v34  ;;  %v1437_v37 = vadd.f32 %v418_v35, %v284_v32 }
 0x134   : > { %v420_v38 = vpop.f32.mrf.mxu0 }
 0x135   : > { %1964 = vst [vmem:[#allocation3_spill] sm:$0xff] %v1435_v36  ;;  %1965 = vst [vmem:[#allocation4_spill] sm:$0xff] %v1437_v37  ;;  %v1440_v39 = vand.u32 2147483647, %v1435_v36  ;;  %v1443_v41 = vmul.f32 0.70710677, %v1437_v37  ;;  %v1445_v42 = vadd.f32 %v420_v38, %v289_v40 }
 0x136   : > { %v422_v44 = vpop.f32.mrf.mxu0 }
 0x137   : > { %1966 = vst [vmem:[#allocation5_spill] sm:$0xff] %v1445_v42  ;;  %v503_v43 = vmul.f32 0.3275911, %v1440_v39  ;;  %v1449_v45 = vand.u32 2147483647, %v1443_v41  ;;  %v1454_v47 = vadd.f32 %v422_v44, %v289_v40  ;;  %vm840_vm13 = vcmp.ge.f32.partialorder %v1443_v41, 0.0 }
 0x138   : > { %v1452_v46 = vmul.f32 0.70710677, %v1445_v42  ;;  %v426_v51 = vpop.f32.mrf.mxu0 }
 0x139   : > { %1968 = vst [vmem:[#allocation7_spill] sm:$0xff] %v1454_v47  ;;  %v519_v48 = vadd.f32 1.0, %v503_v43  ;;  %v504_v49 = vmul.f32 0.3275911, %v1449_v45  ;;  %v1461_v52 = vmul.f32 0.70710677, %v1454_v47  ;;  %v1467_v57 = vadd.f32 %v426_v51, %v294_v30 }
 0x13a   : > { %1967 = vst [vmem:[#allocation6_spill] sm:$0xff] %v1452_v46  ;;  %v1458_v50 = vand.u32 2147483647, %v1452_v46  ;;  %v428_v55 = vpop.f32.mrf.mxu0  ;;  %v743_v43 = vsub.f32 0.0, %v1440_v39 }
 0x13b   : > { %1222 = vrcp.f32 %v519_v48  ;;  %v520_v53 = vadd.f32 1.0, %v504_v49  ;;  %v1465_v56 = vand.u32 2147483647, %v1461_v52  ;;  %1969 = vst [vmem:[#allocation8_spill] sm:$0xff] %v1467_v57  ;;  %v1469_v58 = vadd.f32 %v428_v55, %v294_v30 }
 0x13c   : > { %v505_v54 = vmul.f32 0.3275911, %v1458_v50  ;;  %v1473_v61 = vmul.f32 0.70710677, %v1467_v57  ;;  %v430_v63 = vpop.f32.mrf.mxu0  ;;  %vm842_vm8 = vcmp.ge.f32.partialorder %v1461_v52, 0.0 }
 0x13d   : > { %1224 = vrcp.f32 %v520_v53  ;;  %v506_v60 = vmul.f32 0.3275911, %v1465_v56  ;;  %v1476_v62 = vmul.f32 0.70710677, %v1469_v58  ;;  %v1481_v3 = vadd.f32 %v430_v63, %v299_v31 }
 0x13e   : > { %v521_v59 = vadd.f32 1.0, %v505_v54  ;;  %v1479_v1 = vand.u32 2147483647, %v1473_v61  ;;  %v432_v6 = vpop.f32.mrf.mxu0  ;;  %vm843_vm11 = vcmp.ge.f32.partialorder %v1473_v61, 0.0 }
 0x13f   : > { %v522_v0 = vadd.f32 1.0, %v506_v60  ;;  %1970 = vst [vmem:[#allocation9_spill] sm:$0xff] %v1481_v3  ;;  %v1484_v5 = vand.u32 2147483647, %v1476_v62  ;;  %v1488_v9 = vmul.f32 0.70710677, %v1481_v3  ;;  %v1491_v12 = vadd.f32 %v432_v6, %v299_v31 }
 0x140   : > { %1226 = vrcp.f32 %v521_v59  ;;  %v507_v8 = vmul.f32 0.3275911, %v1479_v1  ;;  %v436_v14 = vpop.f32.mrf.mxu0  ;;  %v759_v60 = vmul.f32 %v743_v43, %v1440_v39  ;;  %vm844_vm1 = vcmp.ge.f32.partialorder %v1476_v62, 0.0 }
 0x141   : > { %1228 = vrcp.f32 %v522_v0  ;;  %v508_v10 = vmul.f32 0.3275911, %v1484_v5  ;;  %v1494_v17 = vand.u32 2147483647, %v1488_v9  ;;  %v1497_v20 = vmul.f32 0.70710677, %v1491_v12 }
 0x142   : > { %v523_v16 = vadd.f32 1.0, %v507_v8  ;;  %v1499_v21 = vadd.f32 %v436_v14, %v304_v13  ;;  %v438_v25 = vpop.f32.mrf.mxu0  ;;  %v775_v39 = vmul.f32 1.442695, %v759_v60  ;;  %vm845_vm6 = vcmp.ge.f32.partialorder %v1488_v9, 0.0 }
 0x143   : > { %v524_v19 = vadd.f32 1.0, %v508_v10  ;;  %v509_v24 = vmul.f32 0.3275911, %v1494_v17  ;;  %v1505_v31 = vand.u32 2147483647, %v1497_v20  ;;  %v1510_v33 = vadd.f32 %v438_v25, %v304_v13 }
 0x144   : > { %1230 = vrcp.f32 %v523_v16  ;;  %v1508_v32 = vmul.f32 0.70710677, %v1499_v21  ;;  %v745_v13 = vsub.f32 0.0, %v1458_v50  ;;  %vm846_vm2 = vcmp.ge.f32.partialorder %v1497_v20, 0.0 }
 0x145   : > { %1232 = vrcp.f32 %v524_v19  ;;  %v1513_v40 = vadd.f32 1.0, %v509_v24  ;;  %v510_v49 = vmul.f32 0.3275911, %v1505_v31  ;;  %v1523_v54 = vmul.f32 0.70710677, %v1510_v33 }
 0x146   : > { %v1520_v51 = vand.u32 2147483647, %v1508_v32  ;;  %v746_v24 = vsub.f32 0.0, %v1465_v56  ;;  %v761_v43 = vmul.f32 %v745_v13, %v1458_v50  ;;  %v750_v50 = vsub.f32 0.0, %v1505_v31 }
 0x147   : > { %1234 = vrcp.f32 %v1513_v40  ;;  %v1531_v6 = vadd.f32 1.0, %v510_v49  ;;  %vm848_vm3 = vcmp.ge.f32.partialorder %v1523_v54, 0.0  ;;  %vm847_vm4 = vcmp.ge.f32.partialorder %v1508_v32, 0.0 }
 0x148   : > { %v1223_v4 = vpop.eup %1222  ;;  %v762_v60 = vmul.f32 %v746_v24, %v1465_v56 }
 0x149   : > { %v551_v7 = vmul.f32 %v1223_v4, %v519_v48  ;;  %1236 = vrcp.f32 %v1531_v6 }
 0x14a   : > { %v1225_v11 = vpop.eup %1224  ;;  %1238 = vpow2.f32 %v775_v39  ;;  %v781_v2 = vmul.f32 1.442695, %v762_v60 }
 0x14b   : > { %v567_v15 = vsub.f32 2.0, %v551_v7  ;;  %v552_v18 = vmul.f32 %v1225_v11, %v520_v53  ;;  %v511_v7 = vmul.f32 0.3275911, %v1520_v51 }
 0x14d   : > { %v1227_v22 = vpop.eup %1226  ;;  %v1501_v23 = vmul.f32 %v1223_v4, %v567_v15  ;;  %v568_v26 = vsub.f32 2.0, %v552_v18  ;;  %v1543_v25 = vadd.f32 1.0, %v511_v7  ;;  %v749_v7 = vsub.f32 0.0, %v1494_v17 }
 0x14e   : > { %v553_v30 = vmul.f32 %v1227_v22, %v521_v59  ;;  %v1229_v35 = vpop.eup %1228  ;;  %v744_v59 = vsub.f32 0.0, %v1449_v45 }
 0x14f   : > { %v599_v38 = vmul.f32 1.0614054, %v1501_v23  ;;  %v1516_v44 = vmul.f32 %v1225_v11, %v568_v26  ;;  %v554_v53 = vmul.f32 %v1229_v35, %v522_v0  ;;  %v1535_v0 = vand.u32 2147483647, %v1523_v54 }
 0x150   : > { %v569_v48 = vsub.f32 2.0, %v553_v30  ;;  %v760_v11 = vmul.f32 %v744_v59, %v1449_v45  ;;  %1240 = vrcp.f32 %v1543_v25 }
 0x151   : > { %v615_v55 = vadd.f32 -1.4531521, %v599_v38  ;;  %v600_v63 = vmul.f32 1.0614054, %v1516_v44  ;;  %v570_v8 = vsub.f32 2.0, %v554_v53  ;;  %v1231_v14 = vpop.eup %1230  ;;  %v747_v53 = vsub.f32 0.0, %v1479_v1 }
 0x152   : > { %v1529_v4 = vmul.f32 %v1227_v22, %v569_v48  ;;  %v1233_v18 = vpop.eup %1232  ;;  %v512_v30 = vmul.f32 0.3275911, %v1535_v0  ;;  %v777_v45 = vmul.f32 1.442695, %v760_v11  ;;  %v555_v48 = vmul.f32 %v1231_v14, %v523_v16 }
 0x153   : > { %v631_v10 = vmul.f32 %v615_v55, %v1501_v23  ;;  %v616_v15 = vadd.f32 -1.4531521, %v600_v63  ;;  %v1545_v26 = vmul.f32 %v1229_v35, %v570_v8  ;;  %v556_v55 = vmul.f32 %v1233_v18, %v524_v19  ;;  %v440_v8 = vpop.f32.mrf.mxu0 }
 0x154   : > { %v601_v22 = vmul.f32 1.0614054, %v1529_v4  ;;  %v748_v63 = vsub.f32 0.0, %v1484_v5  ;;  %v1557_v16 = vadd.f32 1.0, %v512_v30  ;;  %1242 = vpow2.f32 %v777_v45  ;;  %v1235_v13 = vpop.eup %1234 }
 0x155   : > { %v647_v38 = vadd.f32 1.4214138, %v631_v10  ;;  %v632_v49 = vmul.f32 %v616_v15, %v1516_v44  ;;  %v602_v35 = vmul.f32 1.0614054, %v1545_v26  ;;  %v779_v19 = vmul.f32 1.442695, %v761_v43 }
 0x156   : > { %v617_v59 = vadd.f32 -1.4531521, %v601_v22  ;;  %v571_v11 = vsub.f32 2.0, %v555_v48  ;;  %v763_v39 = vmul.f32 %v747_v53, %v1479_v1  ;;  %v1562_v15 = vmul.f32 0.5, %v1469_v58 }
 0x157   : > { %v663_v10 = vmul.f32 %v647_v38, %v1501_v23  ;;  %v648_v56 = vadd.f32 1.4214138, %v632_v49  ;;  %v572_v22 = vsub.f32 2.0, %v556_v55  ;;  %v764_v30 = vmul.f32 %v748_v63, %v1484_v5  ;;  %v442_v49 = vpop.f32.mrf.mxu0  ;;  %v1237_v63 = vpop.eup %1236 }
 0x158   : > { %1971 = vst [vmem:[#allocation10_spill] sm:$0xff] %v1562_v15  ;;  %v633_v24 = vmul.f32 %v617_v59, %v1529_v4  ;;  %v1567_v34 = vadd.f32 %v440_v8, %v1430_v29  ;;  %v618_v38 = vadd.f32 -1.4531521, %v602_v35  ;;  %v765_v45 = vmul.f32 %v749_v7, %v1494_v17 }
 0x159   : > { %v766_v43 = vmul.f32 %v750_v50, %v1505_v31  ;;  %1244 = vrcp.f32 %v1557_v16  ;;  %v679_v1 = vadd.f32 -0.28449672, %v663_v10  ;;  %v1572_v58 = vmul.f32 %v1231_v14, %v571_v11 }
 0x15a   : > { %1972 = vst [vmem:[#allocation11_spill] sm:$0xff] %v1567_v34  ;;  %1246 = vpow2.f32 %v779_v19  ;;  %v557_v48 = vmul.f32 %v1235_v13, %v1513_v40  ;;  %v664_v53 = vmul.f32 %v648_v56, %v1516_v44  ;;  %v783_v5 = vmul.f32 1.442695, %v763_v39  ;;  %v1239_v56 = vpop.eup %1238 }
 0x15b   : > { %v1576_v55 = vmul.f32 %v1233_v18, %v572_v22  ;;  %v1579_v59 = vmul.f32 0.5, %v1491_v12  ;;  %v649_v17 = vadd.f32 1.4214138, %v633_v24  ;;  %1248 = vpow2.f32 %v781_v2  ;;  %v446_v2 = vpop.f32.mrf.mxu0 }
 0x15c   : > { %v785_v31 = vmul.f32 1.442695, %v764_v30  ;;  %v1582_v60 = vmul.f32 0.70710677, %v1567_v34  ;;  %v634_v14 = vmul.f32 %v618_v38, %v1545_v26  ;;  %v787_v35 = vmul.f32 1.442695, %v765_v45 }
 0x15d   : > { %1973 = vst [vmem:[#allocation12_spill] sm:$0xff] %v1579_v59  ;;  %v789_v40 = vmul.f32 1.442695, %v766_v43  ;;  %v1586_v7 = vmul.f32 0.5, %v1499_v21  ;;  %v695_v18 = vmul.f32 %v679_v1, %v1501_v23  ;;  %v603_v50 = vmul.f32 1.0614054, %v1572_v58  ;;  %v1241_v24 = vpop.eup %1240 }
 0x15e   : > { %v573_v12 = vsub.f32 2.0, %v557_v48  ;;  %v751_v8 = vsub.f32 0.0, %v1520_v51  ;;  %v680_v10 = vadd.f32 -0.28449672, %v664_v53  ;;  %1250 = vpow2.f32 %v783_v5 }
 0x15f   : > { %1974 = vst [vmem:[#allocation13_spill] sm:$0xff] %v1586_v7  ;;  %v604_v19 = vmul.f32 1.0614054, %v1576_v55  ;;  %v1593_v11 = vand.u32 2147483647, %v1582_v60  ;;  %v665_v39 = vmul.f32 %v649_v17, %v1529_v4  ;;  %1252 = vpow2.f32 %v785_v31 }
 0x160   : > { %v558_v21 = vmul.f32 %v1237_v63, %v1531_v6  ;;  %v1598_v22 = vadd.f32 %v442_v49, %v1430_v29  ;;  %v650_v30 = vadd.f32 1.4214138, %v634_v14  ;;  %1254 = vpow2.f32 %v787_v35 }
 0x161   : > { %v513_v38 = vmul.f32 0.3275911, %v1593_v11  ;;  %v1602_v45 = vadd.f32 %v446_v2, %v1426_v27  ;;  %v711_v43 = vadd.f32 0.2548296, %v695_v18  ;;  %v619_v1 = vadd.f32 -1.4531521, %v603_v50  ;;  %v1607_v5 = vpop.eup %1242  ;;  %v448_v18 = vpop.f32.mrf.mxu0 }
 0x162   : > { %v1604_v48 = vmul.f32 %v1235_v13, %v573_v12  ;;  %v767_v53 = vmul.f32 %v751_v8, %v1520_v51  ;;  %v696_v6 = vmul.f32 %v680_v10, %v1516_v44  ;;  %v620_v29 = vadd.f32 -1.4531521, %v604_v19 }
 0x163   : > { %1975 = vst [vmem:[#allocation14_spill] sm:$0xff] %v1602_v45  ;;  %1256 = vpow2.f32 %v789_v40  ;;  %v1610_v49 = vadd.f32 1.0, %v513_v38  ;;  %v681_v17 = vadd.f32 -0.28449672, %v665_v39  ;;  %v574_v31 = vsub.f32 2.0, %v558_v21 }
 0x164   : > { %v559_v14 = vmul.f32 %v1241_v24, %v1543_v25  ;;  %v1614_v35 = vmul.f32 0.70710677, %v1598_v22  ;;  %v666_v13 = vmul.f32 %v650_v30, %v1545_v26  ;;  %v1618_v51 = vmul.f32 0.5, %v1510_v33 }
 0x165   : > { %1258 = vrcp.f32 %v1610_v49  ;;  %v1622_v50 = vmul.f32 0.70710677, %v1602_v45  ;;  %v727_v12 = vmul.f32 %v711_v43, %v1501_v23  ;;  %v635_v8 = vmul.f32 %v619_v1, %v1572_v58  ;;  %v450_v1 = vpop.f32.mrf.mxu0 }
 0x166   : > { %1976 = vst [vmem:[#allocation15_spill] sm:$0xff] %v1618_v51  ;;  %v1245_v40 = vpop.eup %1244  ;;  %v605_v25 = vmul.f32 1.0614054, %v1604_v48  ;;  %v791_v2 = vmul.f32 1.442695, %v767_v53  ;;  %v636_v19 = vmul.f32 %v620_v29, %v1576_v55  ;;  %v697_v23 = vmul.f32 %v681_v17, %v1529_v4 }
 0x167   : > { %v1627_v10 = vpop.eup %1246  ;;  %v1632_v39 = vand.u32 2147483647, %v1614_v35  ;;  %v1635_v21 = vand.u32 2147483647, %v1622_v50  ;;  %v712_v30 = vadd.f32 0.2548296, %v696_v6  ;;  %v1638_v38 = vmul.f32 %v1237_v63, %v574_v31 }
 0x168   : > { %v575_v43 = vsub.f32 2.0, %v559_v14  ;;  %v1640_v53 = vpop.eup %1248  ;;  %v682_v42 = vadd.f32 -0.28449672, %v666_v13  ;;  %v560_v29 = vmul.f32 %v1245_v40, %v1557_v16  ;;  %v1645_v57 = vmul.f32 %v1239_v56, %v727_v12 }
 0x169   : > { %v514_v33 = vmul.f32 0.3275911, %v1632_v39  ;;  %v515_v37 = vmul.f32 0.3275911, %v1635_v21  ;;  %v651_v15 = vadd.f32 1.4214138, %v635_v8  ;;  %v1648_v6 = vadd.f32 %v448_v18, %v1426_v27  ;;  %v452_v27 = vpop.f32.mrf.mxu0 }
 0x16a   : > { %1977 = vst [vmem:[#allocation16_spill] sm:$0xff] %v1645_v57  ;;  %v621_v47 = vadd.f32 -1.4531521, %v605_v25  ;;  %v652_v63 = vadd.f32 1.4214138, %v636_v19  ;;  %v1655_v14 = vadd.f32 %v450_v1, %v1428_v28  ;;  %v728_v13 = vmul.f32 %v712_v30, %v1516_v44 }
 0x16b   : > { %1978 = vst [vmem:[#allocation17_spill] sm:$0xff] %v1648_v6  ;;  %v1650_v17 = vadd.f32 1.0, %v514_v33  ;;  %v1652_v31 = vadd.f32 1.0, %v515_v37  ;;  %v1657_v16 = vpop.eup %1250  ;;  %v606_v56 = vmul.f32 1.0614054, %v1638_v38  ;;  %v1661_v12 = vmul.f32 %v1241_v24, %v575_v43 }
 0x16c   : > { %1979 = vst [vmem:[#allocation18_spill] sm:$0xff] %v1655_v14  ;;  %v1664_v8 = vmul.f32 0.70710677, %v1648_v6  ;;  %v1666_v18 = vpop.eup %1252  ;;  %v713_v25 = vadd.f32 0.2548296, %v697_v23  ;;  %v698_v37 = vmul.f32 %v682_v42, %v1545_v26  ;;  %v576_v19 = vsub.f32 2.0, %v560_v29 }
 0x16d   : > { %1260 = vrcp.f32 %v1650_v17  ;;  %v1670_v33 = vpop.eup %1254  ;;  %v637_v30 = vmul.f32 %v621_v47, %v1604_v48  ;;  %v667_v43 = vmul.f32 %v651_v15, %v1572_v58  ;;  %v668_v23 = vmul.f32 %v652_v63, %v1576_v55 }
 0x16e   : > { %1262 = vrcp.f32 %v1652_v31  ;;  %v1676_v24 = vand.u32 2147483647, %v1664_v8  ;;  %v1681_v42 = vmul.f32 0.70710677, %v1655_v14  ;;  %v1684_v1 = vadd.f32 %v452_v27, %v1428_v28 }
 0x16f   : > { %v622_v44 = vadd.f32 -1.4531521, %v606_v56  ;;  %v607_v47 = vmul.f32 1.0614054, %v1661_v12  ;;  %1264 = vpow2.f32 %v791_v2  ;;  %v1691_v3 = vmul.f32 %v1607_v5, %v728_v13 }
 0x170   : > { %1980 = vst [vmem:[#allocation19_spill] sm:$0xff] %v1684_v1  ;;  %v1686_v29 = vpop.eup %1256  ;;  %v516_v7 = vmul.f32 0.3275911, %v1676_v24  ;;  %v714_v15 = vadd.f32 0.2548296, %v698_v37  ;;  %v1693_v36 = vmul.f32 %v1245_v40, %v576_v19  ;;  %v729_v28 = vmul.f32 %v713_v25, %v1529_v4 }
 0x171   : > { %1981 = vst [vmem:[#allocation20_spill] sm:$0xff] %v1691_v3  ;;  %v1696_v63 = vand.u32 2147483647, %v1681_v42  ;;  %v653_v27 = vadd.f32 1.4214138, %v637_v30  ;;  %v638_v40 = vmul.f32 %v622_v44, %v1638_v38  ;;  %vm849_vm5 = vcmp.ge.f32.partialorder %v1582_v60, 0.0 }
 0x172   : > { %v1259_v59 = vpop.eup %1258  ;;  %v1699_v51 = vadd.f32 1.0, %v516_v7  ;;  %v1702_v56 = vmul.f32 0.70710677, %v1684_v1  ;;  %v683_v2 = vadd.f32 -0.28449672, %v667_v43  ;;  %v1716_v43 = vmul.f32 %v1627_v10, %v729_v28 }
 0x173   : > { %v684_v34 = vadd.f32 -0.28449672, %v668_v23  ;;  %v561_v5 = vmul.f32 %v1259_v59, %v1610_v49  ;;  %v517_v13 = vmul.f32 0.3275911, %v1696_v63  ;;  %v623_v37 = vadd.f32 -1.4531521, %v607_v47 }
 0x174   : > { %1982 = vst [vmem:[#allocation21_spill] sm:$0xff] %v1702_v56  ;;  %1266 = vrcp.f32 %v1699_v51  ;;  %v1709_v19 = vand.u32 2147483647, %v1702_v56  ;;  %v608_v7 = vmul.f32 1.0614054, %v1693_v36  ;;  %v730_v49 = vmul.f32 %v714_v15, %v1545_v26 }
 0x175   : > { %v577_v25 = vsub.f32 2.0, %v561_v5  ;;  %v1713_v30 = vadd.f32 1.0, %v517_v13  ;;  %v669_v44 = vmul.f32 %v653_v27, %v1604_v48  ;;  %v1983_v47 = vsub.f32 1.0, %v1645_v57 }
 0x176   : > { %v518_v23 = vmul.f32 0.3275911, %v1709_v19  ;;  %v700_v4 = vmul.f32 %v684_v34, %v1576_v55  ;;  %v1985_v5 = vsub.f32 0.0, %v1535_v0  ;;  %v654_v10 = vadd.f32 1.4214138, %v638_v40 }
 0x177   : > { %v1723_v45 = vsub.f32 0.0, %v1983_v47  ;;  %v1729_v1 = vmul.f32 %v1259_v59, %v577_v25  ;;  %v639_v28 = vmul.f32 %v623_v37, %v1661_v12  ;;  %1268 = vrcp.f32 %v1713_v30 }
 0x178   : > { %v768_v13 = vmul.f32 %v1985_v5, %v1535_v0  ;;  %v1733_v26 = vadd.f32 1.0, %v518_v23  ;;  %v699_v15 = vmul.f32 %v683_v2, %v1572_v58  ;;  %v624_v27 = vadd.f32 -1.4531521, %v608_v7 }
 0x179   : > { %1984 = vst [vmem:[#allocation22_spill] sm:$0xff] %v1723_v45  ;;  %v609_v47 = vmul.f32 1.0614054, %v1729_v1  ;;  %v753_v34 = vsub.f32 0.0, %v1593_v11  ;;  %v1986_v45 = vsub.f32 1.0, %v1691_v3  ;;  %v1744_v40 = vmul.f32 %v1640_v53, %v730_v49 }
 0x17a   : > { %v1261_v57 = vpop.eup %1260  ;;  %v685_v37 = vadd.f32 -0.28449672, %v669_v44  ;;  %v754_v7 = vsub.f32 0.0, %v1632_v39  ;;  %1270 = vrcp.f32 %v1733_v26  ;;  %v716_v5 = vadd.f32 0.2548296, %v700_v4 }
 0x17b   : > { %v1740_v0 = vsub.f32 0.0, %v1986_v45  ;;  %v1263_v25 = vpop.eup %1262  ;;  %v625_v23 = vadd.f32 -1.4531521, %v609_v47  ;;  %v562_v2 = vmul.f32 %v1261_v57, %v1650_v17  ;;  %v670_v14 = vmul.f32 %v654_v10, %v1638_v38 }
 0x17c   : > { %v655_v3 = vadd.f32 1.4214138, %v639_v28  ;;  %v563_v45 = vmul.f32 %v1263_v25, %v1652_v31  ;;  %v640_v53 = vmul.f32 %v624_v27, %v1693_v36  ;;  %v769_v49 = vmul.f32 %v753_v34, %v1593_v11 }
 0x17d   : > { %1987 = vst [vmem:[#allocation23_spill] sm:$0xff] %v1740_v0  ;;  %v1751_v0 = vpop.eup %1264  ;;  %v578_v44 = vsub.f32 2.0, %v562_v2  ;;  %v755_v47 = vsub.f32 0.0, %v1635_v21  ;;  %v1756_v17 = vadd.f32 0.2548296, %v699_v15  ;;  %v701_v59 = vmul.f32 %v685_v37, %v1604_v48 }
 0x17e   : > { %v641_v4 = vmul.f32 %v625_v23, %v1729_v1  ;;  %v579_v6 = vsub.f32 2.0, %v563_v45  ;;  %v793_v10 = vmul.f32 1.442695, %v768_v13  ;;  %v770_v31 = vmul.f32 %v754_v7, %v1632_v39 }
 0x17f   : > { %v1760_v28 = vmul.f32 %v1261_v57, %v578_v44  ;;  %v756_v56 = vsub.f32 0.0, %v1676_v24  ;;  %v1765_v27 = vmul.f32 %v716_v5, %v1576_v55  ;;  %v686_v11 = vadd.f32 -0.28449672, %v670_v14 }
 0x180   : > { %v671_v34 = vmul.f32 %v655_v3, %v1661_v12  ;;  %v1768_v15 = vmul.f32 %v1263_v25, %v579_v6  ;;  %v656_v37 = vadd.f32 1.4214138, %v640_v53  ;;  %v795_v46 = vmul.f32 1.442695, %v769_v49 }
 0x181   : > { %v1267_v2 = vpop.eup %1266  ;;  %v610_v23 = vmul.f32 1.0614054, %v1760_v28  ;;  %v771_v57 = vmul.f32 %v755_v47, %v1635_v21  ;;  %v1772_v13 = vadd.f32 0.2548296, %v701_v59  ;;  %v657_v39 = vadd.f32 1.4214138, %v641_v4 }
 0x182   : > { %v564_v7 = vmul.f32 %v1267_v2, %v1699_v51  ;;  %v611_v55 = vmul.f32 1.0614054, %v1768_v15  ;;  %1272 = vpow2.f32 %v793_v10  ;;  %v797_v5 = vmul.f32 1.442695, %v770_v31 }
 0x183   : > { %v626_v14 = vadd.f32 -1.4531521, %v610_v23  ;;  %v772_v3 = vmul.f32 %v756_v56, %v1676_v24  ;;  %v687_v6 = vadd.f32 -0.28449672, %v671_v34  ;;  %v757_v45 = vsub.f32 0.0, %v1696_v63 }
 0x184   : > { %v580_v25 = vsub.f32 2.0, %v564_v7  ;;  %v627_v53 = vadd.f32 -1.4531521, %v611_v55  ;;  %v1269_v49 = vpop.eup %1268  ;;  %v672_v21 = vmul.f32 %v656_v37, %v1693_v36  ;;  %1274 = vpow2.f32 %v795_v46 }
 0x185   : > { %v642_v59 = vmul.f32 %v626_v14, %v1760_v28  ;;  %v799_v44 = vmul.f32 1.442695, %v771_v57  ;;  %v673_v51 = vmul.f32 %v657_v39, %v1729_v1  ;;  %v565_v4 = vmul.f32 %v1269_v49, %v1713_v30 }
 0x186   : > { %v1781_v47 = vmul.f32 %v1267_v2, %v580_v25  ;;  %v643_v24 = vmul.f32 %v627_v53, %v1768_v15  ;;  %1276 = vpow2.f32 %v797_v5  ;;  %v801_v10 = vmul.f32 1.442695, %v772_v3 }
 0x187   : > { %v658_v56 = vadd.f32 1.4214138, %v642_v59  ;;  %v758_v31 = vsub.f32 0.0, %v1709_v19  ;;  %v1271_v34 = vpop.eup %1270  ;;  %v581_v23 = vsub.f32 2.0, %v565_v4  ;;  %v773_v46 = vmul.f32 %v757_v45, %v1696_v63 }
 0x188   : > { %v612_v37 = vmul.f32 1.0614054, %v1781_v47  ;;  %v659_v57 = vadd.f32 1.4214138, %v643_v24  ;;  %v688_v7 = vadd.f32 -0.28449672, %v672_v21  ;;  %1278 = vpow2.f32 %v799_v44 }
 0x189   : > { %v674_v2 = vmul.f32 %v658_v56, %v1760_v28  ;;  %v566_v30 = vmul.f32 %v1271_v34, %v1733_v26  ;;  %v689_v39 = vadd.f32 -0.28449672, %v673_v51  ;;  %v1790_v55 = vmul.f32 %v1269_v49, %v581_v23 }
 0x18a   : > { %v628_v14 = vadd.f32 -1.4531521, %v612_v37  ;;  %v675_v5 = vmul.f32 %v659_v57, %v1768_v15  ;;  %1280 = vpow2.f32 %v801_v10  ;;  %v774_v63 = vmul.f32 %v758_v31, %v1709_v19 }
 0x18b   : > { %v690_v3 = vadd.f32 -0.28449672, %v674_v2  ;;  %v582_v25 = vsub.f32 2.0, %v566_v30  ;;  %v803_v45 = vmul.f32 1.442695, %v773_v46  ;;  %v702_v44 = vmul.f32 %v686_v11, %v1638_v38 }
 0x18c   : > { %v644_v53 = vmul.f32 %v628_v14, %v1781_v47  ;;  %v613_v21 = vmul.f32 1.0614054, %v1790_v55  ;;  %v691_v59 = vadd.f32 -0.28449672, %v675_v5  ;;  %v704_v26 = vmul.f32 %v688_v7, %v1693_v36 }
 0x18d   : > { %v706_v49 = vmul.f32 %v690_v3, %v1760_v28  ;;  %v1799_v51 = vmul.f32 %v1271_v34, %v582_v25  ;;  %v705_v4 = vmul.f32 %v689_v39, %v1729_v1  ;;  %v703_v10 = vmul.f32 %v687_v6, %v1661_v12 }
 0x18e   : > { %v660_v24 = vadd.f32 1.4214138, %v644_v53  ;;  %v629_v56 = vadd.f32 -1.4531521, %v613_v21  ;;  %v707_v19 = vmul.f32 %v691_v59, %v1768_v15  ;;  %v805_v23 = vmul.f32 1.442695, %v774_v63 }
 0x18f   : > { %v722_v31 = vadd.f32 0.2548296, %v706_v49  ;;  %v614_v46 = vmul.f32 1.0614054, %v1799_v51  ;;  %v1273_v37 = vpop.eup %1272  ;;  %1282 = vpow2.f32 %v803_v45  ;;  %v731_v7 = vmul.f32 %v1756_v17, %v1572_v58 }
 0x190   : > { %v676_v11 = vmul.f32 %v660_v24, %v1781_v47  ;;  %v645_v57 = vmul.f32 %v629_v56, %v1790_v55  ;;  %v723_v34 = vadd.f32 0.2548296, %v707_v19  ;;  %v718_v2 = vadd.f32 0.2548296, %v702_v44 }
 0x191   : > { %v720_v30 = vadd.f32 0.2548296, %v704_v26  ;;  %v630_v39 = vadd.f32 -1.4531521, %v614_v46  ;;  %v1275_v14 = vpop.eup %1274  ;;  %v812_v6 = vmul.f32 %v1666_v18, %v1765_v27  ;;  %v721_v5 = vadd.f32 0.2548296, %v705_v4 }
 0x192   : > { %v692_v3 = vadd.f32 -0.28449672, %v676_v11  ;;  %v661_v25 = vadd.f32 1.4214138, %v645_v57  ;;  %v733_v63 = vmul.f32 %v1772_v13, %v1604_v48  ;;  %v738_v45 = vmul.f32 %v722_v31, %v1760_v28 }
 0x193   : > { %1284 = vpow2.f32 %v805_v23  ;;  %v646_v53 = vmul.f32 %v630_v39, %v1799_v51  ;;  %v1277_v21 = vpop.eup %1276  ;;  %v719_v58 = vadd.f32 0.2548296, %v703_v10  ;;  %v739_v44 = vmul.f32 %v723_v34, %v1768_v15 }
 0x194   : > { %v708_v17 = vmul.f32 %v692_v3, %v1781_v47  ;;  %v677_v59 = vmul.f32 %v661_v25, %v1790_v55  ;;  %v1819_v18 = vmul.f32 %v1657_v16, %v731_v7  ;;  %v734_v48 = vmul.f32 %v718_v2, %v1638_v38 }
 0x195   : > { %v736_v28 = vmul.f32 %v720_v30, %v1693_v36  ;;  %v662_v27 = vadd.f32 1.4214138, %v646_v53  ;;  %v1279_v13 = vpop.eup %1278  ;;  %v828_v26 = vsub.f32 1.0, %v812_v6  ;;  %v737_v49 = vmul.f32 %v721_v5, %v1729_v1 }
 0x196   : > { %v724_v4 = vadd.f32 0.2548296, %v708_v17  ;;  %v693_v24 = vadd.f32 -0.28449672, %v677_v59  ;;  %v826_v56 = vsub.f32 1.0, %v1744_v40  ;;  %v1827_v15 = vmul.f32 %v1670_v33, %v733_v63  ;;  %v1998_v40 = vld [vmem:[#allocation20_spill] sm:$0xff] }
 0x197   : > { %v818_v16 = vmul.f32 %v1277_v21, %v738_v45  ;;  %v678_v19 = vmul.f32 %v662_v27, %v1799_v51  ;;  %v1281_v10 = vpop.eup %1280  ;;  %v735_v38 = vmul.f32 %v719_v58, %v1661_v12  ;;  %v819_v23 = vmul.f32 %v1279_v13, %v739_v44 }
 0x198   : > { %v740_v36 = vmul.f32 %v724_v4, %v1781_v47  ;;  %v709_v31 = vmul.f32 %v693_v24, %v1790_v55  ;;  %v827_v1 = vsub.f32 1.0, %v1819_v18  ;;  %v814_v46 = vmul.f32 %v1686_v29, %v734_v48 }
 0x199   : > { %v816_v11 = vmul.f32 %v1273_v37, %v736_v28  ;;  %v694_v57 = vadd.f32 -0.28449672, %v678_v19  ;;  %v860_v34 = vsub.f32 0.0, %v828_v26  ;;  %v817_v33 = vmul.f32 %v1275_v14, %v737_v49 }
 0x19a   : > { %v820_v7 = vmul.f32 %v1281_v10, %v740_v36  ;;  %v725_v2 = vadd.f32 0.2548296, %v709_v31  ;;  %v1988_v30 = vsub.f32 1.0, %v1716_v43  ;;  %v829_v12 = vsub.f32 1.0, %v1827_v15 }
 0x19b   : > { %v834_v47 = vsub.f32 1.0, %v818_v16  ;;  %v710_v6 = vmul.f32 %v694_v57, %v1799_v51  ;;  %v815_v5 = vmul.f32 %v1751_v0, %v735_v38  ;;  %v835_v14 = vsub.f32 1.0, %v819_v23  ;;  %v1989_v23 = vld [vmem:[#allocation6_spill] sm:$0xff] }
 0x19c   : > { %v1837_v39 = vsub.f32 0.0, %v1988_v30  ;;  %v836_v29 = vsub.f32 1.0, %v820_v7  ;;  %v741_v37 = vmul.f32 %v725_v2, %v1790_v55  ;;  %v1283_v3 = vpop.eup %1282  ;;  %v1847_v25 = vsub.f32 0.0, %v826_v56  ;;  %v1992_v2 = vld [vmem:[#allocation18_spill] sm:$0xff] }
 0x19d   : > { %v830_v63 = vsub.f32 1.0, %v814_v46  ;;  %v832_v45 = vsub.f32 1.0, %v816_v11  ;;  %v726_v53 = vadd.f32 0.2548296, %v710_v6  ;;  %v1851_v21 = vsub.f32 0.0, %v827_v1 }
 0x19e   : > { %v1855_v0 = vsel %vm844_vm1, %v828_v26, %v860_v34  ;;  %v833_v58 = vsub.f32 1.0, %v817_v33  ;;  %v821_v17 = vmul.f32 %v1283_v3, %v741_v37  ;;  %v866_v55 = vsub.f32 0.0, %v834_v47  ;;  %v1990_v34 = vld [vmem:[#allocation21_spill] sm:$0xff]  ;;  %v1994_v3 = vld [vmem:[#allocation14_spill] sm:$0xff] }
 0x19f   : > { %v742_v59 = vmul.f32 %v726_v53, %v1799_v51  ;;  %v868_v44 = vsub.f32 0.0, %v836_v29  ;;  %v861_v28 = vsub.f32 0.0, %v829_v12  ;;  %v831_v27 = vsub.f32 1.0, %v815_v5  ;;  %v1993_v5 = vld [vmem:[#allocation19_spill] sm:$0xff] }
 0x1a0   : > { %v1285_v48 = vpop.eup %1284  ;;  %v837_v62 = vsub.f32 1.0, %v821_v17  ;;  %v867_v13 = vsub.f32 0.0, %v835_v14  ;;  %v862_v26 = vsub.f32 0.0, %v830_v63  ;;  %v864_v49 = vsub.f32 0.0, %v832_v45 }
 0x1a1   : > { %vm850_vm7 = vcmp.ge.f32.partialorder %v1614_v35, 0.0  ;;  %v822_v4 = vmul.f32 %v1285_v48, %v742_v59  ;;  %v865_v24 = vsub.f32 0.0, %v833_v58  ;;  %vm851_vm9 = vcmp.ge.f32.partialorder %v1622_v50, 0.0 }
 0x1a2   : > { %vm852_vm10 = vcmp.ge.f32.partialorder %v1664_v8, 0.0  ;;  %v869_v51 = vsub.f32 0.0, %v837_v62  ;;  %v882_v16 = vsel %vm850_vm7, %v834_v47, %v866_v55  ;;  %vm853_vm12 = vcmp.ge.f32.partialorder %v1681_v42, 0.0 }
 0x1a3   : > { %v838_v19 = vsub.f32 1.0, %v822_v4  ;;  %v884_v10 = vsel %vm852_vm10, %v836_v29, %v868_v44  ;;  %v863_v38 = vsub.f32 0.0, %v831_v27  ;;  %v466_v35 = vmul.f32 0.5, %v1598_v22  ;;  %v1991_v22 = vld [vmem:[#allocation17_spill] sm:$0xff]  ;;  %v1995_v44 = vld [vmem:[#allocation11_spill] sm:$0xff] }
 0x1a4   : > { %v883_v36 = vsel %vm851_vm9, %v835_v14, %v867_v13  ;;  %v885_v31 = vsel %vm853_vm12, %v837_v62, %v869_v51  ;;  %vm841_vm14 = vcmp.ge.f32.partialorder %v1989_v23, 0.0  ;;  %v878_v50 = vsel %vm846_vm2, %v830_v63, %v862_v26  ;;  %v1997_v13 = vld [vmem:[#allocation23_spill] sm:$0xff] }
 0x1a5   : > { %v880_v8 = vsel %vm848_vm3, %v832_v45, %v864_v49  ;;  %v870_v46 = vsub.f32 0.0, %v838_v19  ;;  %v901_v11 = vadd.f32 1.0, %v885_v31  ;;  %v881_v42 = vsel %vm849_vm5, %v833_v58, %v865_v24  ;;  %v2002_v24 = vld [vmem:[#allocation3_spill] sm:$0xff] }
 0x1a6   : > { %v898_v57 = vadd.f32 1.0, %v882_v16  ;;  %vm854_vm15 = vcmp.ge.f32.partialorder %v1990_v34, 0.0  ;;  %v900_v33 = vadd.f32 1.0, %v884_v10  ;;  %v468_v7 = vmul.f32 0.5, %v1991_v22  ;;  %v2003_v16 = vld [vmem:[#allocation9_spill] sm:$0xff]  ;;  %v2008_v23 = vld [vmem:[#allocation7_spill] sm:$0xff] }
 0x1a7   : > { %v469_v30 = vmul.f32 0.5, %v1992_v2  ;;  %v886_v47 = vsel %vm854_vm15, %v838_v19, %v870_v46  ;;  %v899_v6 = vadd.f32 1.0, %v883_v36  ;;  %v879_v20 = vsel %vm847_vm4, %v831_v27, %v863_v38  ;;  %v2004_v19 = vld [vmem:[#allocation13_spill] sm:$0xff]  ;;  %v2005_v38 = vld [vmem:[#allocation22_spill] sm:$0xff] }
 0x1a8   : > { %v896_v54 = vadd.f32 1.0, %v880_v8  ;;  %v470_v29 = vmul.f32 0.5, %v1993_v5  ;;  %v902_v37 = vadd.f32 1.0, %v886_v47  ;;  %v877_v60 = vsel %vm845_vm6, %v829_v12, %v861_v28  ;;  %v1996_v28 = vld [vmem:[#allocation15_spill] sm:$0xff]  ;;  %v2012_v47 = vld [vmem:[#allocation5_spill] sm:$0xff]  ;;  %v2013_v5 = vld [vmem:[#allocation2_spill] sm:$0xff] }
 0x1a9   : > { %v897_v14 = vadd.f32 1.0, %v881_v42  ;;  %v467_v63 = vmul.f32 0.5, %v1994_v3  ;;  %v917_v45 = vmul.f32 %v901_v11, %v469_v30  ;;  %v894_v53 = vadd.f32 1.0, %v878_v50  ;;  %v2009_v50 = vld [vmem:[#allocation10_spill] sm:$0xff]  ;;  %v2010_v11 = vld [vmem:[#allocation8_spill] sm:$0xff] }
 0x1aa   : > { %v914_v58 = vmul.f32 %v898_v57, %v466_v35  ;;  %v916_v17 = vmul.f32 %v900_v33, %v468_v7  ;;  %v918_v55 = vmul.f32 %v902_v37, %v470_v29  ;;  %v874_v32 = vsel %vm842_vm8, %v826_v56, %v1847_v25  ;;  %v2006_v35 = vld [vmem:[#allocation16_spill] sm:$0xff] }
 0x1ab   : > { %v895_v59 = vadd.f32 1.0, %v879_v20  ;;  %v465_v15 = vmul.f32 0.5, %v1995_v44  ;;  %v915_v48 = vmul.f32 %v899_v6, %v467_v63  ;;  %v875_v9 = vsel %vm843_vm11, %v827_v1, %v1851_v21  ;;  %v2001_v21 = vld [vmem:[#allocation12_spill] sm:$0xff] }
 0x1ac   : > { %v892_v12 = vadd.f32 1.0, %v1855_v0  ;;  %v912_v27 = vmul.f32 %v896_v54, %v1996_v28  ;;  %v934_v62 = vpack.c.bf16 %v918_v55, %v916_v17  ;;  %v1999_v26 = vsub.f32 1.0, %v1998_v40  ;;  %v2011_v33 = vld [vmem:[#allocation4_spill] sm:$0xff]  ;;  %v942_v17 = vpop.permute.xlu1 %941 }
 0x1ad   : > { %v893_v56 = vadd.f32 1.0, %v877_v60  ;;  %v913_v25 = vmul.f32 %v897_v14, %v465_v15  ;;  %v933_v49 = vpack.c.bf16 %v917_v45, %v915_v48  ;;  %v2000_v18 = vsub.f32 1.0, %v1716_v43  ;;  %v991_v45 = vpop.trf.xlu0 }
 0x1ae   : > { %v872_v52 = vsel %vm840_vm13, %v1999_v26, %v1997_v13  ;;  %v890_v1 = vadd.f32 1.0, %v874_v32  ;;  %v910_v0 = vmul.f32 %v894_v53, %v2001_v21  ;;  %1014 = vmatprep.subr.bf16.mxu1 %v934_v62  ;;  %v932_v4 = vpack.c.bf16 %v914_v58, %v912_v27 }
 0x1af   : > { %v873_v61 = vsel %vm841_vm14, %v2000_v18, %v1837_v39  ;;  %vm839_vm0 = vcmp.ge.f32.partialorder %v2002_v24, 0.0  ;;  %v891_v51 = vadd.f32 1.0, %v875_v9  ;;  %v461_v41 = vmul.f32 0.5, %v2003_v16  ;;  %1015 = vmatpush1.bf16.msra.mxu1 %v933_v49 }
 0x1b0   : > { %v911_v10 = vmul.f32 %v895_v59, %v2004_v19  ;;  %v2007_v36 = vsub.f32 1.0, %v2006_v35  ;;  %v888_v31 = vadd.f32 1.0, %v872_v52  ;;  %v458_v39 = vmul.f32 0.5, %v2008_v23  ;;  %1016 = vmatprep.subr.bf16.mxu1 %v932_v4  ;;  %v947_v55 = vpop.permute.xlu1 %946 }
 0x1b1   : > { %v908_v8 = vmul.f32 %v892_v12, %v2009_v50  ;;  %v889_v46 = vadd.f32 1.0, %v873_v61  ;;  %v459_v42 = vmul.f32 0.5, %v2010_v11  ;;  %v909_v57 = vmul.f32 %v893_v56, %v461_v41  ;;  %v992_v58 = vpop.trf.xlu0 }
 0x1b2   : > { %v871_v43 = vsel %vm839_vm0, %v2007_v36, %v2005_v38  ;;  %v931_v34 = vpack.c.bf16 %v913_v25, %v911_v10  ;;  %v456_v22 = vmul.f32 0.5, %v2011_v33  ;;  %v906_v7 = vmul.f32 %v890_v1, %v458_v39 }
 0x1b3   : > { %v930_v2 = vpack.c.bf16 %v910_v0, %v908_v8  ;;  %v887_v30 = vadd.f32 1.0, %v871_v43  ;;  %v457_v6 = vmul.f32 0.5, %v2012_v47  ;;  %v907_v20 = vmul.f32 %v891_v51, %v459_v42 }
 0x1b4   : > { %1017 = vmatpush1.bf16.msra.mxu1 %v931_v34  ;;  %v904_v54 = vmul.f32 %v888_v31, %v456_v22  ;;  %v455_v29 = vmul.f32 0.5, %v2013_v5  ;;  %vm999_vm1 = vcmask 523264   ;;  %v2014_v53 = vmov 0   ;;  %v952_v12 = vpop.permute.xlu1 %951 }
 0x1b5   : > { %1018 = vmatprep.subr.bf16.mxu1 %v930_v2  ;;  %v905_v37 = vmul.f32 %v889_v46, %v457_v6  ;;  %v929_v60 = vpack.c.bf16 %v909_v57, %v907_v20 }
 0x1b6   : > { %v928_v14 = vpack.c.bf16 %v906_v7, %v904_v54  ;;  %v903_v3 = vmul.f32 %v887_v30, %v455_v29 }
 0x1b8   : > { %1019 = vmatpush1.bf16.msra.mxu1 %v929_v60  ;;  %v927_v63 = vpack.c.bf16 %v905_v37, %v903_v3  ;;  %v957_v52 = vpop.permute.xlu1 %956 }
 0x1b9   : > { %1020 = vmatprep.subr.bf16.mxu1 %v928_v14 }
 0x1bc   : > { %1021 = vmatpush1.bf16.msra.mxu1 %v927_v63 }
 0x1bf   : > { %1177 = vmatmul.mubr.msk.bf16.vlgmr.msra.gmra.mxu1 %vm999_vm1, %v991_v45 }
 0x1c0   : > { %1048 = vmatprep.mubr.bf16.mxu1 %v2014_v53 }
 0x1c7   : > { %1178 = vmatmul.mubr.msk.bf16.gmra.mxu1 %vm999_vm1, %v992_v58 }
 0x27f   : > { %v1040_v32 = vpop.f32.mrf.mxu1 }
 0x280   : > { %v1041_v59 = vadd.f32 %v1040_v32, %v942_v17 }
 0x281   : > { %v1042_v44 = vpop.f32.mrf.mxu1 }
 0x282   : > { %1059 = vst [vmem:[%s262_s23] sm:$0xff] %v1041_v59  ;;  %v1043_v15 = vadd.f32 %v1042_v44, %v942_v17 }
 0x283   : > { %v1044_v48 = vpop.f32.mrf.mxu1 }
 0x284   : > { %1060 = vst [vmem:[%s262_s23 + $0x8] sm:$0xff] %v1043_v15  ;;  %v1045_v9 = vadd.f32 %v1044_v48, %v947_v55 }
 0x285   : > { %v1046_v28 = vpop.f32.mrf.mxu1 }
 0x286   : > { %1061 = vst [vmem:[%s262_s23 + $0x10] sm:$0xff] %v1045_v9  ;;  %v1047_v27 = vadd.f32 %v1046_v28, %v947_v55 }
 0x287   : > { %v1050_v62 = vpop.f32.mrf.mxu1 }
 0x288   : > { %1062 = vst [vmem:[%s262_s23 + $0x18] sm:$0xff] %v1047_v27  ;;  %v1051_v13 = vadd.f32 %v1050_v62, %v952_v12 }
 0x289   : > { %v1052_v40 = vpop.f32.mrf.mxu1 }
 0x28a   : > { %1063 = vst [vmem:[%s262_s23 + $0x20] sm:$0xff] %v1051_v13  ;;  %v1053_v26 = vadd.f32 %v1052_v40, %v952_v12 }
 0x28b   : > { %v1054_v56 = vpop.f32.mrf.mxu1 }
 0x28c   : > { %1064 = vst [vmem:[%s262_s23 + $0x28] sm:$0xff] %v1053_v26  ;;  %v1055_v25 = vadd.f32 %v1054_v56, %v957_v52 }
 0x28d   : > { %v1056_v49 = vpop.f32.mrf.mxu1 }
 0x28e   : > { %1065 = vst [vmem:[%s262_s23 + $0x30] sm:$0xff] %v1055_v25  ;;  %v1057_v18 = vadd.f32 %v1056_v49, %v957_v52 }
 0x290   : > { %1066 = vst [vmem:[%s262_s23 + $0x38] sm:$0xff] %v1057_v18 }
 0x291 PF: > { %s15_s20 = sadd.s32 1, %s1308_s20   ;;  %s2015_s18 = smov %s1304_s19 }
 0x292   : > { %p12_p5 = scmp.ge.s32.totalorder %s15_s20, 4   ;;  %s2016_s19 = smov %s2018_s21 }
 0x294   :  { %14 = sbr.rel (!%p12_p5) target bundleno = 2 (0x2), region = 70 }

</bundles_post_ra>
